<compile_context>
chip_gen: v5e
topology: v5e:2x2
jax: 0.10.0
libtpu: 0.0.40
codegen_flags: <defaults>
</compile_context>

<pallas_src>
import functools

import jax
import jax.numpy as jnp
import numpy as np
from jax.experimental import pallas as pl
from jax.experimental.pallas import tpu as pltpu


def _tconv_bn_relu_kernel(x_ref, w_ref, shift_ref, o_ref):
    # x_ref:     (TH*WP, KC*KC*CIN) bf16 -- im2col'd rows for this row block
    # w_ref:     (KC*KC*CIN, CO2P)  bf16 -- fused phase-decomposed taps, BN scale folded in
    # shift_ref: (1, CO2P)          f32  -- folded BN shift (per phase-expanded channel)
    # o_ref:     (TH*WP, CO2P)      bf16 -- TH phase rows x WP cols, channels last (lane-dense)
    acc = jnp.dot(x_ref[...], w_ref[...], preferred_element_type=jnp.float32)
    o_ref[...] = jnp.maximum(acc + shift_ref[...], 0.0).astype(o_ref.dtype)


def transposed_conv_bn_relu(x_nchw, weight, gamma, beta, running_mean, running_var,
                            *, k, stride, eps=1e-5, th=None):
    """x_nchw: (N, Cin, H, W); weight: ConvTranspose2d layout (Cin, Cout, k, k).
    Returns NCHW f32 matching ConvTranspose2d(no bias) -> BatchNorm2d(eval) -> ReLU."""
    N, CIN, H, W = x_nchw.shape
    COUT = weight.shape[1]
    K, S = int(k), int(stride)
    KC = -(-K // S)                       # ceil(K/S): taps per axis after the phase split
    KP = KC * S
    HOUT = (H - 1) * S + K
    WOUT = (W - 1) * S + K
    MROWS = H + KC - 1                    # valid phase-grid rows
    NCOLS = W + KC - 1                    # valid phase-grid cols
    WP = W + 2 * (KC - 1)                 # padded width of the flat layout
    if th is None:                        # default: one row block per batch element
        MP = ((MROWS + 7) // 8) * 8
        th = MP
    else:                                 # custom th: th*WP should be a multiple of 8
        MP = ((MROWS + th - 1) // th) * th
    HP = MP + KC                          # allocated padded rows (covers all tap offsets)
    CO2 = S * S * COUT                    # phase-expanded output channels
    CO2P = ((CO2 + 127) // 128) * 128     # ... padded up to full 128-lane width
    KCIN = KC * KC * CIN                  # fused contraction depth after im2col
    f32 = jnp.float32
    bf16 = jnp.bfloat16

    # ---- fold BatchNorm (eval mode) into scale / shift -------------------------------
    scale = gamma.astype(f32) / jnp.sqrt(running_var.astype(f32) + eps)
    shift = beta.astype(f32) - running_mean.astype(f32) * scale

    # ---- phase-decomposed, tap-fused weight:
    #      w2[(j*KC+i)*CIN+ci, (ph,pw,co)] = W[ci, co, (KC-1-j)*S+ph, (KC-1-i)*S+pw]
    #      (0 if kernel index >= k), with the BN scale folded in.
    w = weight.astype(f32) * scale[None, :, None, None]              # (CIN, COUT, K, K)
    w = jnp.pad(w, ((0, 0), (0, 0), (0, KP - K), (0, KP - K)))       # (CIN, COUT, KP, KP)
    w = w.reshape(CIN, COUT, KC, S, KC, S)                           # [ci, co, j, ph, i, pw]
    w = w[:, :, ::-1, :, ::-1, :]                                    # flip tap axes
    w = jnp.transpose(w, (2, 4, 0, 3, 5, 1))                         # [j, i, ci, ph, pw, co]
    w2 = w.reshape(KC * KC, CIN, CO2)
    w2 = jnp.pad(w2, ((0, 0), (0, 0), (0, CO2P - CO2)))
    w2 = w2.reshape(KCIN, CO2P).astype(bf16)                         # fused contraction dim

    shift2 = jnp.pad(jnp.tile(shift, (S * S,)), (0, CO2P - CO2)).reshape(1, CO2P)

    # ---- compact (un-dilated) padded input, rows flattened, then wrapper-side im2col:
    #      channel-concat of the KC^2 shifted views so every grid step is one contiguous
    #      (th*WP, KCIN) slab and the kernel needs no dynamic slicing at all.
    x_nhwc = jnp.transpose(x_nchw, (0, 2, 3, 1)).astype(bf16)         # (N, H, W, CIN)
    x_pad = jnp.pad(x_nhwc, ((0, 0), (KC - 1, HP - H - (KC - 1)),
                             (KC - 1, KC - 1), (0, 0)))               # (N, HP, WP, CIN)
    x_flat = x_pad.reshape(N, HP * WP, CIN)
    views = [x_flat[:, j * WP + i: j * WP + i + MP * WP, :]
             for j in range(KC) for i in range(KC)]
    x_im2col = jnp.concatenate(views, axis=-1)                        # (N, MP*WP, KCIN)

    # ---- cost / VMEM hints -------------------------------------------------------------
    in_block_bytes = th * WP * KCIN * 2
    out_block_bytes = th * WP * CO2P * 2
    vmem_needed = 2 * in_block_bytes + 2 * out_block_bytes + KCIN * CO2P * 2 + CO2P * 4
    vmem_limit = int(min(max(2 * vmem_needed, 4 * 1024 * 1024), 64 * 1024 * 1024))
    cost = pl.CostEstimate(
        flops=2 * N * MP * WP * KCIN * CO2P,
        transcendentals=0,
        bytes_accessed=(N * MP * WP * KCIN * 2          # im2col input (bf16)
                        + KCIN * CO2P * 2 + CO2P * 4    # weights + shift
                        + N * MP * WP * CO2P * 2))      # bf16 output

    out = pl.pallas_call(
        _tconv_bn_relu_kernel,
        out_shape=jax.ShapeDtypeStruct((N, MP * WP, CO2P), bf16),
        grid=(N, MP // th),
        in_specs=[
            pl.BlockSpec((None, th * WP, KCIN), lambda n, rb: (n, rb, 0)),
            pl.BlockSpec((KCIN, CO2P), lambda n, rb: (0, 0)),
            pl.BlockSpec((1, CO2P), lambda n, rb: (0, 0)),
        ],
        out_specs=pl.BlockSpec((None, th * WP, CO2P), lambda n, rb: (n, rb, 0)),
        compiler_params=pltpu.CompilerParams(
            dimension_semantics=("parallel", "parallel"),
            vmem_limit_bytes=vmem_limit),
        cost_estimate=cost,
    )(x_im2col, w2, shift2)

    # ---- depth-to-space (phase interleave) + crop (in bf16), upcast at the very end ----
    out = out.reshape(N, MP, WP, CO2P)[:, :MROWS, :NCOLS, :CO2]
    out = out.reshape(N, MROWS, NCOLS, S, S, COUT)
    out = jnp.transpose(out, (0, 1, 3, 2, 4, 5))                      # [n, m, ph, c, pw, co]
    out = out.reshape(N, MROWS * S, NCOLS * S, COUT)[:, :HOUT, :WOUT, :]
    return jnp.transpose(out, (0, 3, 1, 2)).astype(f32)               # NCHW f32


def _reference(x_f32, w_tconv_f32, shift, *, k, stride):
    """Pure-JAX reference: ConvTranspose2d (no bias) via lax dilated conv, + shift, ReLU."""
    x_nhwc = jnp.transpose(x_f32, (0, 2, 3, 1))
    w_hwio = jnp.transpose(w_tconv_f32[:, :, ::-1, ::-1], (2, 3, 0, 1))
    y = jax.lax.conv_general_dilated(
        x_nhwc, w_hwio, window_strides=(1, 1),
        padding=[(k - 1, k - 1), (k - 1, k - 1)],
        lhs_dilation=(stride, stride),
        dimension_numbers=("NHWC", "HWIO", "NHWC"),
        precision=jax.lax.Precision.HIGHEST)
    y = jnp.maximum(y + shift, 0.0)
    return jnp.transpose(y, (0, 3, 1, 2))


if __name__ == "__main__":
    # batch=2, inp_dim=4, out_dim=8, 16x16 spatial, kernel k=3, stride=2, with_bn=True.
    N, CIN, H, W = 2, 4, 16, 16
    COUT, K, STRIDE, EPS = 8, 3, 2, 1e-5

    key = jax.random.PRNGKey(0)
    kx, kw = jax.random.split(key)
    x = jax.random.normal(kx, (N, CIN, H, W), dtype=jnp.float32)
    # ConvTranspose2d weight shape: (in_channels, out_channels, kH, kW)
    weight = 0.1 * jax.random.normal(kw, (CIN, COUT, K, K), dtype=jnp.float32)
    # Deterministic, non-trivial BatchNorm parameters / running stats (eval mode).
    gamma = 1.0 + 0.1 * jnp.arange(COUT, dtype=jnp.float32)
    beta = 0.05 * jnp.arange(COUT, dtype=jnp.float32) - 0.1
    running_mean = 0.01 * jnp.arange(COUT, dtype=jnp.float32)
    running_var = 1.0 + 0.02 * jnp.arange(COUT, dtype=jnp.float32)

    out = transposed_conv_bn_relu(x, weight, gamma, beta, running_mean, running_var,
                                  k=K, stride=STRIDE, eps=EPS)
    out = jax.block_until_ready(out)
    assert out.shape == (N, COUT, (H - 1) * STRIDE + K, (W - 1) * STRIDE + K), out.shape

    # Reference with the same bf16-rounded operands; tolerance also covers the deliberate
    # bf16 rounding of the kernel's output store (<= 0.5 ulp_bf16 ~ 0.2% relative).
    scale = gamma / jnp.sqrt(running_var + EPS)
    shift = beta - running_mean * scale
    x_b = x.astype(jnp.bfloat16).astype(jnp.float32)
    w_b = (weight * scale[None, :, None, None]).astype(jnp.bfloat16).astype(jnp.float32)
    ref = _reference(x_b, w_b, shift, k=K, stride=STRIDE)

    np.testing.assert_allclose(np.asarray(out), np.asarray(ref), rtol=5e-3, atol=2e-3)
    print("KERNEL_OK")
</pallas_src>

<mosaic_0001>
module attributes {stable_mosaic.version = 11 : i64} {
  func.func @_tconv_bn_relu_kernel(%arg0: i32, %arg1: i32, %arg2: memref<1x432x16xbf16, #tpu.memory_space<vmem>>, %arg3: memref<16x128xbf16, #tpu.memory_space<vmem>>, %arg4: memref<1x128xf32, #tpu.memory_space<vmem>>, %arg5: memref<1x432x128xbf16, #tpu.memory_space<vmem>>) attributes {dimension_semantics = [#tpu.dimension_semantics<parallel>, #tpu.dimension_semantics<parallel>], iteration_bounds = array<i64: 2, 1>, scalar_prefetch = 0 : i64, scratch_operands = 0 : i64, tpu.core_type = #tpu.core_type<tc>, window_params = [{transform_indices = @transform_0, window_bounds = array<i64: 1, 432, 16>}, {pipeline_mode = #tpu.pipeline_mode<synchronous>, transform_indices = @transform_1, window_bounds = array<i64: 16, 128>}, {pipeline_mode = #tpu.pipeline_mode<synchronous>, transform_indices = @transform_2, window_bounds = array<i64: 1, 128>}, {transform_indices = @transform_3, window_bounds = array<i64: 1, 432, 128>}]} {
    %c0 = arith.constant 0 : index
    %c0_0 = arith.constant 0 : index
    %c0_1 = arith.constant 0 : index
    %0 = vector.load %arg2[%c0, %c0_0, %c0_1] : memref<1x432x16xbf16, #tpu.memory_space<vmem>>, vector<1x432x16xbf16>
    %1 = vector.shape_cast %0 : vector<1x432x16xbf16> to vector<432x16xbf16>
    %c0_2 = arith.constant 0 : index
    %c0_3 = arith.constant 0 : index
    %2 = vector.load %arg3[%c0_2, %c0_3] : memref<16x128xbf16, #tpu.memory_space<vmem>>, vector<16x128xbf16>
    %cst = arith.constant dense<0.000000e+00> : vector<432x128xf32>
    %3 = tpu.matmul %1, %2, %cst {dimension_numbers = #tpu.dot_dimension_numbers<[1], [0], [0], [1], [0, 0, 1, 1], [], []>} : vector<432x16xbf16>, vector<16x128xbf16>, vector<432x128xf32> -> vector<432x128xf32>
    %c0_4 = arith.constant 0 : index
    %c0_5 = arith.constant 0 : index
    %4 = vector.load %arg4[%c0_4, %c0_5] : memref<1x128xf32, #tpu.memory_space<vmem>>, vector<1x128xf32>
    %5 = vector.broadcast %4 : vector<1x128xf32> to vector<432x128xf32>
    %6 = arith.addf %3, %5 : vector<432x128xf32>
    %cst_6 = arith.constant 0.000000e+00 : f32
    %7 = vector.broadcast %cst_6 : f32 to vector<432x128xf32>
    %8 = arith.maximumf %6, %7 : vector<432x128xf32>
    %9 = arith.truncf %8 : vector<432x128xf32> to vector<432x128xbf16>
    %c0_7 = arith.constant 0 : index
    %c0_8 = arith.constant 0 : index
    %c0_9 = arith.constant 0 : index
    %10 = vector.load %arg5[%c0_7, %c0_8, %c0_9] : memref<1x432x128xbf16, #tpu.memory_space<vmem>>, vector<1x432x128xbf16>
    %11 = vector.shape_cast %10 : vector<1x432x128xbf16> to vector<432x128xbf16>
    %12 = vector.shape_cast %9 : vector<432x128xbf16> to vector<1x432x128xbf16>
    tpu.vector_store %arg5[%c0_7, %c0_8, %c0_9], %12 {strides = array<i32>} : memref<1x432x128xbf16, #tpu.memory_space<vmem>>, vector<1x432x128xbf16>,
    return
  }
  func.func @transform_0(%arg0: i32, %arg1: i32) -> (i32, i32, i32) {
    %c0_i32 = arith.constant 0 : i32
    %c0_i32_0 = arith.constant 0 : i32
    return %arg0, %arg1, %c0_i32 : i32, i32, i32
  }
  func.func @transform_1(%arg0: i32, %arg1: i32) -> (i32, i32) {
    %c0_i32 = arith.constant 0 : i32
    %c0_i32_0 = arith.constant 0 : i32
    %c0_i32_1 = arith.constant 0 : i32
    return %c0_i32, %c0_i32_0 : i32, i32
  }
  func.func @transform_2(%arg0: i32, %arg1: i32) -> (i32, i32) {
    %c0_i32 = arith.constant 0 : i32
    %c0_i32_0 = arith.constant 0 : i32
    %c0_i32_1 = arith.constant 0 : i32
    return %c0_i32, %c0_i32_0 : i32, i32
  }
  func.func @transform_3(%arg0: i32, %arg1: i32) -> (i32, i32, i32) {
    %c0_i32 = arith.constant 0 : i32
    %c0_i32_0 = arith.constant 0 : i32
    return %arg0, %arg1, %c0_i32 : i32, i32, i32
  }
}

</mosaic_0001>

<bundles_post_ra>
// kernel: tpu_custom_call.1
= control target key start
LH: loop header
LB: loop body
LE: loop exit
PB: predicated region body
PF: predicated region fallthrough
CT: control target
= control target key end

     0   :  { %8 = vsyncpa [#allocation3], 0  ;;  %s1639_s0 = inlined_call_operand.vmem [shape: bf16[2,432,16], index: 0, kind: input, shape index: {}]   ;;  %s1640_s1 = inlined_call_operand.vmem [shape: bf16[16,128], index: 1, kind: input, shape index: {}]   ;;  %s1641_s2 = inlined_call_operand.vmem [shape: f32[1,128], index: 2, kind: input, shape index: {}]   ;;  %s1642_s3 = inlined_call_operand.hbm [shape: bf16[2,432,128], index: 3, kind: output, shape index: {}]  }
   0x1   :  { %10 = vsyncpa [#allocation3 + $0x1], 0  ;;  %s1390_s12 = smov 0   ;;  %s1392_s13 = smov 0  }
   0x2   :  { %s1394_s14 = smov 0   ;;  %s1396_s15 = smov 0  }
   0x3   :  { %s1398_s16 = smov 0   ;;  %s1400_s17 = smov 0  }
   0x4 LB: > { %s887_s18 = sadd.s32 4294967295, %s1366_s17   ;;  %s888_s19 = sadd.s32 4294967294, %s1366_s17   ;;  %s1366_s17 = sphi %s1400_s17, %s16_s17   ;;  %s1362_s16 = sphi %s1398_s16, %s1649_s16   ;;  %s1358_s15 = sphi %s1396_s15, %s1648_s15   ;;  %s1354_s14 = sphi %s1394_s14, %s1647_s14   ;;  %s1350_s13 = sphi %s1392_s13, %s1646_s13   ;;  %s1346_s12 = sphi %s1390_s12, %s1645_s12  }
   0x5   : > { %s28_s20 = sadd.s32 1, %s1362_s16  ;;  %s107_s21 = sadd.s32 1, %s1354_s14 }
   0x6   : > { %p30_p0 = scmp.ge.s32.totalorder %s28_s20, 2  ;;  %p117_p1 = scmp.ne.s32.totalorder %s1354_s14, %s1350_s13 }
   0x7   : > { %p118_p2 = scmp.eq.s32.totalorder %s887_s18, 1  ;;  %p123_p3 = scmp.ne.s32.totalorder %s1350_s13, %s1346_s12 }
   0x8   : > { %s1651_s20 = smov (%p30_p0, %s28_s20), 0  ;;  %p124_p5 = scmp.eq.s32.totalorder %s888_s19, 1 }
   0x9   : > { %p1430_p4 = por %p118_p2, %p117_p1  ;;  %s102_s23 = ssub.s32 %s1362_s16, %s1651_s20 }
   0xa   : > { %p891_p6 = scmp.ge.s32.totalorder %s1366_s17, 1  ;;  %p105_p7 = scmp.eq.s32.totalorder %s102_s23, 0 }
   0xb   : > { %p1437_p8 = por %p124_p5, %p123_p3  ;;  %p161_p9 = scmp.lt.s32.totalorder %s1366_s17, 3 }
   0xc   : > { %s1443_s25 = scalar_select %p105_p7, %s1354_s14, %s107_s21  }
   0xd   : > { %p162_p10 = pnand %p891_p6, %p161_p9 }
   0xe   : > { %p190_p11 = scmp.lt.s32.totalorder (!%p162_p10), %s1358_s15, 1  ;;  %s186_s8 = sand.u32 (!%p162_p10), 1, %s1350_s13  }
   0xf   : > { %165 = sbr.rel (%p162_p10) target bundleno = 273 (0x111), region = 32  ;;  %s791_s26 = scalar_lea.sflag (!%p162_p10), [#allocation3], %s186_s8 }
  0x10   : > { %s1227_s9 = smul.u32 (!%p162_p10), 216, %s186_s8  ;;  %s1308_s4 = scalar_lea.hbm (!%p162_p10), %s1642_s3, 432 }
  0x11   : > { %s1229_s11 = smul.u32 (!%p162_p10), 216, %s1358_s15 }
  0x12   : > { %s1523_s10 = scalar_lea.vmem (!%p162_p10), [#allocation2], %s1227_s9 }
  0x13   : > { %s804_s21 = scalar_lea.hbm (!%p162_p10), %s1642_s3, %s1229_s11 }
  0x14   : > { %v1062_v0 = vld [vmem:[%s1640_s1] sm:$0xff]  ;;  %s191_s28 = scalar_select %p190_p11, %s1358_s15, 1  ;;  %vm402_vm0 = vcmask 130048  }
  0x15   : > { %491 = vmatpush.bf16.msra.mxu0 %v1062_v0  ;;  %1224 = vmatpush.bf16.msra.mxu1 %v1062_v0  ;;  %v1512_v30 = vld [vmem:[%s1641_s2] ss:$0 sm:$0xff]  ;;  %s805_s15 = sshll.u32 %s1523_s10, 4  ;;  %s807_s23 = sshll.u32 %s804_s21, 4  ;;  %s806_s15 = int_to_ptr.vmem [resolvable:$true] %s805_s15  ;;  %s808_s23 = int_to_ptr.hbm [resolvable:$true] %s807_s23 }
  0x16   : > { %1225 = vmatpush.bf16.msra.mxu2 %v1062_v0  ;;  %1226 = vmatpush.bf16.msra.mxu3 %v1062_v0  ;;  %s1228_s29 = smul.u32 216, %s191_s28  ;;  %s1302_s27 = sshra.s32 %s808_s23, 4  ;;  %s1303_s27 = int_to_ptr.hbm [resolvable:$true] %s1302_s27 }
  0x17   : > { %s1304_s28 = scalar_lea.hbm %s1303_s27, 216  ;;  %p1309_p1 = scmp.lt.s32.totalorder %s1303_s27, %s1642_s3 }
  0x18   : > { %s1453_s5 = scalar_lea.vmem %s1639_s0, %s1228_s29  ;;  %p1305_p12 = scmp.ne.s32.totalorder %s1303_s27, %s1304_s28 }
  0x19   : > { %v1035_v1 = vld [vmem:[%s1453_s5] sm:$0xff]  ;;  %v1042_v2 = vld [vmem:[%s1453_s5 + $0x38] sm:$0xff]  ;;  %v1049_v3 = vld [vmem:[%s1453_s5 + $0x70] sm:$0xff]  ;;  %p1310_p2 = scmp.lt.s32.totalorder %s1308_s4, %s1304_s28 }
  0x1a   : > { %v1056_v4 = vld [vmem:[%s1453_s5 + $0xa8] sm:$0xff]  ;;  %1005 = vmatmul.msk.bf16.vlgmr.msra.gmra.mxu0 %vm402_vm0, %v1035_v1  ;;  %1012 = vmatmul.msk.bf16.vlgmr.msra.gmra.mxu1 %vm402_vm0, %v1042_v2  ;;  %v1043_v6 = vld [vmem:[%s1453_s5 + $0x40] sm:$0xff]  ;;  %v1050_v7 = vld [vmem:[%s1453_s5 + $0x78] sm:$0xff]  ;;  %p1306_p13 = pnand %p1305_p12, %p1430_p4 }
  0x1b   : > { %1019 = vmatmul.msk.bf16.vlgmr.msra.gmra.mxu2 %vm402_vm0, %v1049_v3  ;;  %1026 = vmatmul.msk.bf16.vlgmr.msra.gmra.mxu3 %vm402_vm0, %v1056_v4  ;;  %v1036_v5 = vld [vmem:[%s1453_s5 + $0x8] sm:$0xff]  ;;  %v1057_v8 = vld [vmem:[%s1453_s5 + $0xb0] sm:$0xff]  ;;  %v1051_v11 = vld [vmem:[%s1453_s5 + $0x80] sm:$0xff]  ;;  %p1311_p3 = por %p1310_p2, %p1309_p1 }
  0x1c   : > { %v1037_v9 = vld [vmem:[%s1453_s5 + $0x10] sm:$0xff]  ;;  %v1044_v10 = vld [vmem:[%s1453_s5 + $0x48] sm:$0xff]  ;;  %v1058_v12 = vld [vmem:[%s1453_s5 + $0xb8] sm:$0xff]  ;;  %p1307_p0 = pneg %p1306_p13 }
  0x1d   : > { %v1038_v13 = vld [vmem:[%s1453_s5 + $0x18] sm:$0xff]  ;;  %v1045_v14 = vld [vmem:[%s1453_s5 + $0x50] sm:$0xff]  ;;  %v1052_v15 = vld [vmem:[%s1453_s5 + $0x88] sm:$0xff] }
  0x1e   : > { %v1059_v16 = vld [vmem:[%s1453_s5 + $0xc0] sm:$0xff]  ;;  %v1046_v18 = vld [vmem:[%s1453_s5 + $0x58] sm:$0xff]  ;;  %v1053_v19 = vld [vmem:[%s1453_s5 + $0x90] sm:$0xff]  ;;  %p1312_p5 = pnand %p1311_p3, %p1307_p0 }
  0x1f   : > { %v1039_v17 = vld [vmem:[%s1453_s5 + $0x20] sm:$0xff]  ;;  %v1060_v20 = vld [vmem:[%s1453_s5 + $0xc8] sm:$0xff]  ;;  %v1054_v23 = vld [vmem:[%s1453_s5 + $0x98] sm:$0xff] }
  0x20   : > { %v1040_v21 = vld [vmem:[%s1453_s5 + $0x28] sm:$0xff]  ;;  %v1047_v22 = vld [vmem:[%s1453_s5 + $0x60] sm:$0xff]  ;;  %v1061_v24 = vld [vmem:[%s1453_s5 + $0xd0] sm:$0xff] }
  0x21   : > { %v1041_v25 = vld [vmem:[%s1453_s5 + $0x30] sm:$0xff]  ;;  %v1048_v26 = vld [vmem:[%s1453_s5 + $0x68] sm:$0xff]  ;;  %v1055_v27 = vld [vmem:[%s1453_s5 + $0xa0] sm:$0xff] }
  0x2a   : > { %1006 = vmatmul.msk.bf16.gmra.mxu0 %vm402_vm0, %v1036_v5  ;;  %1013 = vmatmul.msk.bf16.gmra.mxu1 %vm402_vm0, %v1043_v6 }
  0x2b   : > { %1020 = vmatmul.msk.bf16.gmra.mxu2 %vm402_vm0, %v1050_v7  ;;  %1027 = vmatmul.msk.bf16.gmra.mxu3 %vm402_vm0, %v1057_v8 }
  0x3a   : > { %1007 = vmatmul.msk.bf16.gmra.mxu0 %vm402_vm0, %v1037_v9  ;;  %1014 = vmatmul.msk.bf16.gmra.mxu1 %vm402_vm0, %v1044_v10 }
  0x3b   : > { %1021 = vmatmul.msk.bf16.gmra.mxu2 %vm402_vm0, %v1051_v11  ;;  %1028 = vmatmul.msk.bf16.gmra.mxu3 %vm402_vm0, %v1058_v12 }
  0x4a   : > { %1008 = vmatmul.msk.bf16.gmra.mxu0 %vm402_vm0, %v1038_v13  ;;  %1015 = vmatmul.msk.bf16.gmra.mxu1 %vm402_vm0, %v1045_v14 }
  0x4b   : > { %1022 = vmatmul.msk.bf16.gmra.mxu2 %vm402_vm0, %v1052_v15  ;;  %1029 = vmatmul.msk.bf16.gmra.mxu3 %vm402_vm0, %v1059_v16 }
  0x5a   : > { %1009 = vmatmul.msk.bf16.gmra.mxu0 %vm402_vm0, %v1039_v17  ;;  %1016 = vmatmul.msk.bf16.gmra.mxu1 %vm402_vm0, %v1046_v18 }
  0x5b   : > { %1023 = vmatmul.msk.bf16.gmra.mxu2 %vm402_vm0, %v1053_v19  ;;  %1030 = vmatmul.msk.bf16.gmra.mxu3 %vm402_vm0, %v1060_v20 }
  0x6a   : > { %1010 = vmatmul.msk.bf16.gmra.mxu0 %vm402_vm0, %v1040_v21  ;;  %1017 = vmatmul.msk.bf16.gmra.mxu1 %vm402_vm0, %v1047_v22 }
  0x6b   : > { %1024 = vmatmul.msk.bf16.gmra.mxu2 %vm402_vm0, %v1054_v23  ;;  %1031 = vmatmul.msk.bf16.gmra.mxu3 %vm402_vm0, %v1061_v24 }
  0x7a   : > { %1011 = vmatmul.msk.bf16.gmra.mxu0 %vm402_vm0, %v1041_v25  ;;  %1018 = vmatmul.msk.bf16.gmra.mxu1 %vm402_vm0, %v1048_v26 }
  0x7b   : > { %1025 = vmatmul.msk.bf16.gmra.mxu2 %vm402_vm0, %v1055_v27 }
  0x97   : > { %v493_v28 = vpop.f32.mrf.mxu0  ;;  %v528_v29 = vpop.f32.mrf.mxu1 }
  0x98   : > { %v494_v31 = vadd.f32 %v1512_v30, %v493_v28  ;;  %v529_v32 = vadd.f32 %v1512_v30, %v528_v29 }
  0x9a   : > { %v628_v39 = vmax.f32 %v494_v31, 0.0  ;;  %v642_v40 = vmax.f32 %v529_v32, 0.0 }
  0x9e   : > { %v563_v33 = vpop.f32.mrf.mxu2  ;;  %v598_v34 = vpop.f32.mrf.mxu3 }
  0x9f   : > { %v495_v35 = vpop.f32.mrf.mxu0  ;;  %v530_v36 = vpop.f32.mrf.mxu1  ;;  %v599_v43 = vadd.f32 %v1512_v30, %v598_v34  ;;  %v564_v46 = vadd.f32 %v1512_v30, %v563_v33 }
  0xa0   : > { %v496_v37 = vadd.f32 %v1512_v30, %v495_v35  ;;  %v531_v38 = vadd.f32 %v1512_v30, %v530_v36 }
  0xa1   : > { %v670_v50 = vmax.f32 %v599_v43, 0.0  ;;  %v656_v54 = vmax.f32 %v564_v46, 0.0 }
  0xa2   : > { %v629_v41 = vmax.f32 %v496_v37, 0.0  ;;  %v643_v42 = vmax.f32 %v531_v38, 0.0 }
  0xa4   : > { %v1066_v44 = vpack.c.bf16 %v629_v41, %v628_v39  ;;  %v1101_v45 = vpack.c.bf16 %v643_v42, %v642_v40 }
  0xa6   : > { %1067 = vst [vmem:[%s1523_s10] sm:$0xff] %v1066_v44   ;;  %v565_v47 = vpop.f32.mrf.mxu2  ;;  %v600_v48 = vpop.f32.mrf.mxu3 }
  0xa7   : > { %1204 = vst [vmem:[%s1523_s10 + $0x38] sm:$0xff] %v1101_v45   ;;  %v566_v49 = vadd.f32 %v1512_v30, %v565_v47  ;;  %v498_v51 = vpop.f32.mrf.mxu0  ;;  %v533_v52 = vpop.f32.mrf.mxu1  ;;  %v601_v53 = vadd.f32 %v1512_v30, %v600_v48 }
  0xa8   : > { %v499_v59 = vadd.f32 %v1512_v30, %v498_v51  ;;  %v534_v60 = vadd.f32 %v1512_v30, %v533_v52 }
  0xa9   : > { %v657_v55 = vmax.f32 %v566_v49, 0.0  ;;  %v671_v56 = vmax.f32 %v601_v53, 0.0 }
  0xaa   : > { %v630_v3 = vmax.f32 %v499_v59, 0.0  ;;  %v644_v4 = vmax.f32 %v534_v60, 0.0 }
  0xab   : > { %v1136_v57 = vpack.c.bf16 %v657_v55, %v656_v54  ;;  %v1171_v58 = vpack.c.bf16 %v671_v56, %v670_v50 }
  0xad   : > { %1211 = vst [vmem:[%s1523_s10 + $0x70] sm:$0xff] %v1136_v57  }
  0xae   : > { %v568_v61 = vpop.f32.mrf.mxu2  ;;  %1218 = vst [vmem:[%s1523_s10 + $0xa8] sm:$0xff] %v1171_v58   ;;  %v603_v62 = vpop.f32.mrf.mxu3 }
  0xaf   : > { %v500_v63 = vpop.f32.mrf.mxu0  ;;  %v535_v0 = vpop.f32.mrf.mxu1  ;;  %v604_v7 = vadd.f32 %v1512_v30, %v603_v62  ;;  %v569_v10 = vadd.f32 %v1512_v30, %v568_v61 }
  0xb0   : > { %v501_v1 = vadd.f32 %v1512_v30, %v500_v63  ;;  %v536_v2 = vadd.f32 %v1512_v30, %v535_v0 }
  0xb1   : > { %v672_v14 = vmax.f32 %v604_v7, 0.0  ;;  %v658_v18 = vmax.f32 %v569_v10, 0.0 }
  0xb2   : > { %v631_v5 = vmax.f32 %v501_v1, 0.0  ;;  %v645_v6 = vmax.f32 %v536_v2, 0.0 }
  0xb4   : > { %v1071_v8 = vpack.c.bf16 %v631_v5, %v630_v3  ;;  %v1106_v9 = vpack.c.bf16 %v645_v6, %v644_v4 }
  0xb6   : > { %1198 = vst [vmem:[%s1523_s10 + $0x8] sm:$0xff] %v1071_v8   ;;  %v570_v11 = vpop.f32.mrf.mxu2  ;;  %v605_v12 = vpop.f32.mrf.mxu3 }
  0xb7   : > { %1205 = vst [vmem:[%s1523_s10 + $0x40] sm:$0xff] %v1106_v9   ;;  %v571_v13 = vadd.f32 %v1512_v30, %v570_v11  ;;  %v503_v15 = vpop.f32.mrf.mxu0  ;;  %v538_v16 = vpop.f32.mrf.mxu1  ;;  %v606_v17 = vadd.f32 %v1512_v30, %v605_v12 }
  0xb8   : > { %v504_v23 = vadd.f32 %v1512_v30, %v503_v15  ;;  %v539_v24 = vadd.f32 %v1512_v30, %v538_v16 }
  0xb9   : > { %v659_v19 = vmax.f32 %v571_v13, 0.0  ;;  %v673_v20 = vmax.f32 %v606_v17, 0.0 }
  0xba   : > { %v632_v32 = vmax.f32 %v504_v23, 0.0  ;;  %v646_v33 = vmax.f32 %v539_v24, 0.0 }
  0xbb   : > { %v1141_v21 = vpack.c.bf16 %v659_v19, %v658_v18  ;;  %v1176_v22 = vpack.c.bf16 %v673_v20, %v672_v14 }
  0xbd   : > { %1212 = vst [vmem:[%s1523_s10 + $0x78] sm:$0xff] %v1141_v21  }
  0xbe   : > { %v573_v25 = vpop.f32.mrf.mxu2  ;;  %1219 = vst [vmem:[%s1523_s10 + $0xb0] sm:$0xff] %v1176_v22   ;;  %v608_v26 = vpop.f32.mrf.mxu3 }
  0xbf   : > { %v505_v27 = vpop.f32.mrf.mxu0  ;;  %v540_v28 = vpop.f32.mrf.mxu1  ;;  %v609_v36 = vadd.f32 %v1512_v30, %v608_v26  ;;  %v574_v39 = vadd.f32 %v1512_v30, %v573_v25 }
  0xc0   : > { %v506_v29 = vadd.f32 %v1512_v30, %v505_v27  ;;  %v541_v31 = vadd.f32 %v1512_v30, %v540_v28 }
  0xc1   : > { %v674_v43 = vmax.f32 %v609_v36, 0.0  ;;  %v660_v47 = vmax.f32 %v574_v39, 0.0 }
  0xc2   : > { %v633_v34 = vmax.f32 %v506_v29, 0.0  ;;  %v647_v35 = vmax.f32 %v541_v31, 0.0 }
  0xc4   : > { %v1076_v37 = vpack.c.bf16 %v633_v34, %v632_v32  ;;  %v1111_v38 = vpack.c.bf16 %v647_v35, %v646_v33 }
  0xc6   : > { %1199 = vst [vmem:[%s1523_s10 + $0x10] sm:$0xff] %v1076_v37   ;;  %v575_v40 = vpop.f32.mrf.mxu2  ;;  %v610_v41 = vpop.f32.mrf.mxu3 }
  0xc7   : > { %1206 = vst [vmem:[%s1523_s10 + $0x48] sm:$0xff] %v1111_v38   ;;  %v576_v42 = vadd.f32 %v1512_v30, %v575_v40  ;;  %v508_v44 = vpop.f32.mrf.mxu0  ;;  %v543_v45 = vpop.f32.mrf.mxu1  ;;  %v611_v46 = vadd.f32 %v1512_v30, %v610_v41 }
  0xc8   : > { %v509_v52 = vadd.f32 %v1512_v30, %v508_v44  ;;  %v544_v53 = vadd.f32 %v1512_v30, %v543_v45 }
  0xc9   : > { %v661_v48 = vmax.f32 %v576_v42, 0.0  ;;  %v675_v49 = vmax.f32 %v611_v46, 0.0 }
  0xca   : > { %v634_v60 = vmax.f32 %v509_v52, 0.0  ;;  %v648_v61 = vmax.f32 %v544_v53, 0.0 }
  0xcb   : > { %v1146_v50 = vpack.c.bf16 %v661_v48, %v660_v47  ;;  %v1181_v51 = vpack.c.bf16 %v675_v49, %v674_v43 }
  0xcd   : > { %1213 = vst [vmem:[%s1523_s10 + $0x80] sm:$0xff] %v1146_v50  }
  0xce   : > { %v578_v54 = vpop.f32.mrf.mxu2  ;;  %1220 = vst [vmem:[%s1523_s10 + $0xb8] sm:$0xff] %v1181_v51   ;;  %v613_v55 = vpop.f32.mrf.mxu3 }
  0xcf   : > { %v510_v56 = vpop.f32.mrf.mxu0  ;;  %v545_v57 = vpop.f32.mrf.mxu1  ;;  %v614_v0 = vadd.f32 %v1512_v30, %v613_v55  ;;  %v579_v3 = vadd.f32 %v1512_v30, %v578_v54 }
  0xd0   : > { %v511_v58 = vadd.f32 %v1512_v30, %v510_v56  ;;  %v546_v59 = vadd.f32 %v1512_v30, %v545_v57 }
  0xd1   : > { %v676_v7 = vmax.f32 %v614_v0, 0.0  ;;  %v662_v11 = vmax.f32 %v579_v3, 0.0 }
  0xd2   : > { %v635_v62 = vmax.f32 %v511_v58, 0.0  ;;  %v649_v63 = vmax.f32 %v546_v59, 0.0 }
  0xd4   : > { %v1081_v1 = vpack.c.bf16 %v635_v62, %v634_v60  ;;  %v1116_v2 = vpack.c.bf16 %v649_v63, %v648_v61 }
  0xd6   : > { %1200 = vst [vmem:[%s1523_s10 + $0x18] sm:$0xff] %v1081_v1   ;;  %v580_v4 = vpop.f32.mrf.mxu2  ;;  %v615_v5 = vpop.f32.mrf.mxu3 }
  0xd7   : > { %1207 = vst [vmem:[%s1523_s10 + $0x50] sm:$0xff] %v1116_v2   ;;  %v581_v6 = vadd.f32 %v1512_v30, %v580_v4  ;;  %v513_v8 = vpop.f32.mrf.mxu0  ;;  %v548_v9 = vpop.f32.mrf.mxu1  ;;  %v616_v10 = vadd.f32 %v1512_v30, %v615_v5 }
  0xd8   : > { %v514_v16 = vadd.f32 %v1512_v30, %v513_v8  ;;  %v549_v17 = vadd.f32 %v1512_v30, %v548_v9 }
  0xd9   : > { %v663_v12 = vmax.f32 %v581_v6, 0.0  ;;  %v677_v13 = vmax.f32 %v616_v10, 0.0 }
  0xda   : > { %v636_v24 = vmax.f32 %v514_v16, 0.0  ;;  %v650_v25 = vmax.f32 %v549_v17, 0.0 }
  0xdb   : > { %v1151_v14 = vpack.c.bf16 %v663_v12, %v662_v11  ;;  %v1186_v15 = vpack.c.bf16 %v677_v13, %v676_v7 }
  0xdd   : > { %1214 = vst [vmem:[%s1523_s10 + $0x88] sm:$0xff] %v1151_v14  }
  0xde   : > { %v583_v18 = vpop.f32.mrf.mxu2  ;;  %1221 = vst [vmem:[%s1523_s10 + $0xc0] sm:$0xff] %v1186_v15   ;;  %v618_v19 = vpop.f32.mrf.mxu3 }
  0xdf   : > { %v515_v20 = vpop.f32.mrf.mxu0  ;;  %v550_v21 = vpop.f32.mrf.mxu1  ;;  %v619_v28 = vadd.f32 %v1512_v30, %v618_v19  ;;  %v584_v32 = vadd.f32 %v1512_v30, %v583_v18 }
  0xe0   : > { %v516_v22 = vadd.f32 %v1512_v30, %v515_v20  ;;  %v551_v23 = vadd.f32 %v1512_v30, %v550_v21 }
  0xe1   : > { %v678_v36 = vmax.f32 %v619_v28, 0.0  ;;  %v664_v40 = vmax.f32 %v584_v32, 0.0 }
  0xe2   : > { %v637_v26 = vmax.f32 %v516_v22, 0.0  ;;  %v651_v27 = vmax.f32 %v551_v23, 0.0 }
  0xe4   : > { %v1086_v29 = vpack.c.bf16 %v637_v26, %v636_v24  ;;  %v1121_v31 = vpack.c.bf16 %v651_v27, %v650_v25 }
  0xe6   : > { %1201 = vst [vmem:[%s1523_s10 + $0x20] sm:$0xff] %v1086_v29   ;;  %v585_v33 = vpop.f32.mrf.mxu2  ;;  %v620_v34 = vpop.f32.mrf.mxu3 }
  0xe7   : > { %1208 = vst [vmem:[%s1523_s10 + $0x58] sm:$0xff] %v1121_v31   ;;  %v586_v35 = vadd.f32 %v1512_v30, %v585_v33  ;;  %v518_v37 = vpop.f32.mrf.mxu0  ;;  %v553_v38 = vpop.f32.mrf.mxu1  ;;  %v621_v39 = vadd.f32 %v1512_v30, %v620_v34 }
  0xe8   : > { %v519_v45 = vadd.f32 %v1512_v30, %v518_v37  ;;  %v554_v46 = vadd.f32 %v1512_v30, %v553_v38 }
  0xe9   : > { %v665_v41 = vmax.f32 %v586_v35, 0.0  ;;  %v679_v42 = vmax.f32 %v621_v39, 0.0 }
  0xea   : > { %v638_v53 = vmax.f32 %v519_v45, 0.0  ;;  %v652_v54 = vmax.f32 %v554_v46, 0.0 }
  0xeb   : > { %v1156_v43 = vpack.c.bf16 %v665_v41, %v664_v40  ;;  %v1191_v44 = vpack.c.bf16 %v679_v42, %v678_v36 }
  0xed   : > { %1215 = vst [vmem:[%s1523_s10 + $0x90] sm:$0xff] %v1156_v43  }
  0xee   : > { %v588_v47 = vpop.f32.mrf.mxu2  ;;  %1222 = vst [vmem:[%s1523_s10 + $0xc8] sm:$0xff] %v1191_v44   ;;  %v623_v48 = vpop.f32.mrf.mxu3 }
  0xef   : > { %v520_v49 = vpop.f32.mrf.mxu0  ;;  %v555_v50 = vpop.f32.mrf.mxu1  ;;  %v624_v57 = vadd.f32 %v1512_v30, %v623_v48  ;;  %v589_v60 = vadd.f32 %v1512_v30, %v588_v47 }
  0xf0   : > { %v521_v51 = vadd.f32 %v1512_v30, %v520_v49  ;;  %v556_v52 = vadd.f32 %v1512_v30, %v555_v50 }
  0xf1   : > { %v680_v0 = vmax.f32 %v624_v57, 0.0  ;;  %v666_v4 = vmax.f32 %v589_v60, 0.0 }
  0xf2   : > { %v639_v55 = vmax.f32 %v521_v51, 0.0  ;;  %v653_v56 = vmax.f32 %v556_v52, 0.0 }
  0xf4   : > { %v1091_v58 = vpack.c.bf16 %v639_v55, %v638_v53  ;;  %v1126_v59 = vpack.c.bf16 %v653_v56, %v652_v54 }
  0xf6   : > { %1202 = vst [vmem:[%s1523_s10 + $0x28] sm:$0xff] %v1091_v58   ;;  %v590_v61 = vpop.f32.mrf.mxu2  ;;  %v625_v62 = vpop.f32.mrf.mxu3 }
  0xf7   : > { %1209 = vst [vmem:[%s1523_s10 + $0x60] sm:$0xff] %v1126_v59   ;;  %v591_v63 = vadd.f32 %v1512_v30, %v590_v61  ;;  %v523_v1 = vpop.f32.mrf.mxu0  ;;  %v558_v2 = vpop.f32.mrf.mxu1  ;;  %v626_v3 = vadd.f32 %v1512_v30, %v625_v62 }
  0xf8   : > { %v524_v9 = vadd.f32 %v1512_v30, %v523_v1  ;;  %v559_v10 = vadd.f32 %v1512_v30, %v558_v2 }
  0xf9   : > { %v667_v5 = vmax.f32 %v591_v63, 0.0  ;;  %v681_v6 = vmax.f32 %v626_v3, 0.0 }
  0xfa   : > { %v640_v16 = vmax.f32 %v524_v9, 0.0  ;;  %v654_v17 = vmax.f32 %v559_v10, 0.0 }
  0xfb   : > { %v1161_v7 = vpack.c.bf16 %v667_v5, %v666_v4  ;;  %v1196_v8 = vpack.c.bf16 %v681_v6, %v680_v0 }
  0xfd   : > { %1216 = vst [vmem:[%s1523_s10 + $0x98] sm:$0xff] %v1161_v7  }
  0xfe   : > { %v593_v11 = vpop.f32.mrf.mxu2  ;;  %1223 = vst [vmem:[%s1523_s10 + $0xd0] sm:$0xff] %v1196_v8  }
  0xff   : > { %v525_v12 = vpop.f32.mrf.mxu0  ;;  %v560_v13 = vpop.f32.mrf.mxu1  ;;  %v594_v22 = vadd.f32 %v1512_v30, %v593_v11 }
 0x100   : > { %v526_v14 = vadd.f32 %v1512_v30, %v525_v12  ;;  %v561_v15 = vadd.f32 %v1512_v30, %v560_v13 }
 0x101   : > { %v668_v25 = vmax.f32 %v594_v22, 0.0 }
 0x102   : > { %v641_v18 = vmax.f32 %v526_v14, 0.0  ;;  %v655_v19 = vmax.f32 %v561_v15, 0.0 }
 0x104   : > { %v1096_v20 = vpack.c.bf16 %v641_v18, %v640_v16  ;;  %v1131_v21 = vpack.c.bf16 %v655_v19, %v654_v17 }
 0x106   : > { %1203 = vst [vmem:[%s1523_s10 + $0x30] sm:$0xff] %v1096_v20   ;;  %v595_v23 = vpop.f32.mrf.mxu2 }
 0x107   : > { %1210 = vst [vmem:[%s1523_s10 + $0x68] sm:$0xff] %v1131_v21   ;;  %v596_v24 = vadd.f32 %v1512_v30, %v595_v23 }
 0x109   : > { %v669_v26 = vmax.f32 %v596_v24, 0.0 }
 0x10b   : > { %v1166_v27 = vpack.c.bf16 %v669_v26, %v668_v25 }
 0x10d   : > { %1217 = vst [vmem:[%s1523_s10 + $0xa0] sm:$0xff] %v1166_v27  }
 0x10e   : > { %1315 = shalt.err (!%p1312_p5)
}
 0x10f   : > { %s1368_s7 = smov 64   ;;  %s1369_s8 = smov 4  }
 0x110   : > { %1230 = dma.vmem_to_hbm [thread:$0]  (%p1430_p4), %s806_s15, 3456, %s808_s23, %s791_s26, %s1368_s7, %s1368_s7, %s1369_s8  }
 0x111 PF: > { %p1236_p6 = scmp.ge.s32.totalorder %s1366_s17, 2  ;;  %s822_s9 = sand.u32 1, %s1346_s12  }
 0x112   : > { %s823_s10 = scalar_lea.sflag [#allocation3], %s822_s9 }
 0x113   : > { %p1233_p7 = pnand %p1236_p6, %p1437_p8 }
 0x115   : > { %p1234_p9 = pneg %p1233_p7 }
 0x117   : > { %1341 = dma.done.wait (%p1234_p9), %s823_s10, 3456  }
 0x118   : > { %1343 = vsyncadd (%p1234_p9), %s823_s10, 4294963840  ;;  %s16_s17 = sadd.s32 1, %s1366_s17   ;;  %s1645_s12 = smov %s1350_s13 }
 0x119   : > { %p13_p10 = scmp.ge.s32.totalorder %s16_s17, 4   ;;  %s1646_s13 = smov %s1354_s14 }
 0x11a   : > { %s1647_s14 = smov %s1443_s25  ;;  %s1648_s15 = smov %s1362_s16 }
 0x11b   : > { %s1649_s16 = smov %s1651_s20  ;;  %15 = sbr.rel (!%p13_p10) target bundleno = 4 (0x4), region = 67 }
 0x120   :  { %829 = vsyncpa [#allocation3], 1 }
 0x121   :  { %831 = vsyncpa [#allocation3 + $0x1], 1 }

</bundles_post_ra>
